<compile_context>
chip_gen: v5e
topology: v5e:2x2
jax: 0.10.0
libtpu: 0.0.40
codegen_flags: <defaults>
</compile_context>

<pallas_src>
import jax
import jax.numpy as jnp
from jax.experimental import pallas as pl
from jax.experimental.pallas import tpu as pltpu


def _round_up(n, m):
    return ((n + m - 1) // m) * m


def _sluice_kernel(alpha_t_ref, x_ref, o_ref):
    # alpha_t_ref: (S, S) = alpha^T, resident in VMEM across the whole grid.
    # x_ref / o_ref: (S, tm) slab (batch dim squeezed out of the block).
    # out[i, n] = sum_j alpha[j, i] * x[j, n] == (alpha^T @ x)[i, n]
    o_ref[...] = jnp.dot(
        alpha_t_ref[...], x_ref[...], preferred_element_type=jnp.float32
    ).astype(o_ref.dtype)


def sluice_forward(x, alpha, *, tm=None):
    """x: (B, S, *spatial) with the subspace axis on dim 1; alpha: (S, S)."""
    orig_shape = x.shape
    B, S = int(orig_shape[0]), int(orig_shape[1])
    M = 1
    for d in orig_shape[2:]:
        M *= int(d)

    # Free, contiguous reshape (no transpose, no extra HBM pass).
    x3 = x.reshape(B, S, M)

    # Lane-tile selection: target ~2 MiB of in+out HBM traffic per grid step,
    # 128-aligned, clamped to the (128-rounded) extent of M.
    if tm is None:
        itemsize = jnp.dtype(x.dtype).itemsize
        bytes_per_lane = 2 * S * itemsize                  # in + out per lane
        target_step_bytes = 2 * 1024 * 1024
        lanes = max(128, target_step_bytes // bytes_per_lane)
        lanes = (lanes // 128) * 128
        tm = int(min(lanes, _round_up(M, 128)))
    grid_m = pl.cdiv(M, tm)

    # alpha^T, matched to the activation dtype (tiny array; negligible cost).
    alpha_t = alpha.T.astype(x.dtype)

    out3 = pl.pallas_call(
        _sluice_kernel,
        out_shape=jax.ShapeDtypeStruct((B, S, M), x.dtype),
        grid_spec=pltpu.PrefetchScalarGridSpec(
            num_scalar_prefetch=0,
            grid=(B, grid_m),
            in_specs=[
                # alpha^T: full (S, S) block, identical for every grid step
                # (constant index_map -> stays resident in VMEM).
                pl.BlockSpec((S, S), lambda b, m: (0, 0)),
                # x tile: one batch (squeezed), all S subspaces, tm lanes.
                pl.BlockSpec((None, S, tm), lambda b, m: (b, 0, m)),
            ],
            out_specs=pl.BlockSpec((None, S, tm), lambda b, m: (b, 0, m)),
        ),
        compiler_params=pltpu.CompilerParams(
            dimension_semantics=("parallel", "parallel"),
        ),
    )(alpha_t, x3)

    # Free reshape back to the original layout (B, S, D, H, W, C).
    return out3.reshape(orig_shape)


if __name__ == "__main__":
    nb_subspace = 4
    c_param = 0.9
    spread = 0.1

    key = jax.random.PRNGKey(0)
    k_alpha, k_x = jax.random.split(key)

    # Deterministic alpha init mirroring the module's __init__:
    # off-diagonal ~ N(mean, std), diagonal = c.
    mean = (1.0 - c_param) / (nb_subspace - 1)
    std = spread / (nb_subspace - 1)
    alpha = mean + std * jax.random.normal(
        k_alpha, (nb_subspace, nb_subspace), dtype=jnp.float32
    )
    diag = jnp.arange(nb_subspace)
    alpha = alpha.at[diag, diag].set(c_param)

    # Small 6-D input consistent with the module's forward (ndim == 6,
    # subspace on axis 1, no size-1 dims so .squeeze() semantics are clean).
    x = jax.random.normal(
        k_x, (2, nb_subspace, 8, 8, 8, 8), dtype=jnp.float32
    )

    out = sluice_forward(x, alpha)
    out = jax.block_until_ready(out)

    # Reference (pure JAX) check of the kernel semantics.
    ref = jnp.einsum("bjdhwc,ji->bidhwc", x, alpha)
    assert out.shape == x.shape
    assert jnp.allclose(out, ref, atol=1e-5, rtol=1e-5)

    print("KERNEL_OK")
</pallas_src>

<mosaic_0001>
module attributes {stable_mosaic.version = 11 : i64} {
  func.func @_sluice_kernel(%arg0: i32, %arg1: i32, %arg2: memref<4x4xf32, #tpu.memory_space<vmem>>, %arg3: memref<1x4x4096xf32, #tpu.memory_space<vmem>>, %arg4: memref<1x4x4096xf32, #tpu.memory_space<vmem>>) attributes {dimension_semantics = [#tpu.dimension_semantics<parallel>, #tpu.dimension_semantics<parallel>], iteration_bounds = array<i64: 2, 1>, scalar_prefetch = 0 : i64, scratch_operands = 0 : i64, tpu.core_type = #tpu.core_type<tc>, window_params = [{pipeline_mode = #tpu.pipeline_mode<synchronous>, transform_indices = @transform_0, window_bounds = array<i64: 4, 4>}, {transform_indices = @transform_1, window_bounds = array<i64: 1, 4, 4096>}, {transform_indices = @transform_2, window_bounds = array<i64: 1, 4, 4096>}]} {
    %c0 = arith.constant 0 : index
    %c0_0 = arith.constant 0 : index
    %0 = vector.load %arg2[%c0, %c0_0] : memref<4x4xf32, #tpu.memory_space<vmem>>, vector<4x4xf32>
    %c0_1 = arith.constant 0 : index
    %c0_2 = arith.constant 0 : index
    %c0_3 = arith.constant 0 : index
    %1 = vector.load %arg3[%c0_1, %c0_2, %c0_3] : memref<1x4x4096xf32, #tpu.memory_space<vmem>>, vector<1x4x4096xf32>
    %2 = vector.shape_cast %1 : vector<1x4x4096xf32> to vector<4x4096xf32>
    %cst = arith.constant dense<0.000000e+00> : vector<4x4096xf32>
    %3 = tpu.matmul %0, %2, %cst {dimension_numbers = #tpu.dot_dimension_numbers<[1], [0], [0], [1], [0, 0, 1, 1], [], []>} : vector<4x4xf32>, vector<4x4096xf32>, vector<4x4096xf32> -> vector<4x4096xf32>
    %c0_4 = arith.constant 0 : index
    %c0_5 = arith.constant 0 : index
    %c0_6 = arith.constant 0 : index
    %4 = vector.load %arg4[%c0_4, %c0_5, %c0_6] : memref<1x4x4096xf32, #tpu.memory_space<vmem>>, vector<1x4x4096xf32>
    %5 = vector.shape_cast %4 : vector<1x4x4096xf32> to vector<4x4096xf32>
    %6 = vector.shape_cast %3 : vector<4x4096xf32> to vector<1x4x4096xf32>
    tpu.vector_store %arg4[%c0_4, %c0_5, %c0_6], %6 {strides = array<i32>} : memref<1x4x4096xf32, #tpu.memory_space<vmem>>, vector<1x4x4096xf32>,
    return
  }
  func.func @transform_0(%arg0: i32, %arg1: i32) -> (i32, i32) {
    %c0_i32 = arith.constant 0 : i32
    %c0_i32_0 = arith.constant 0 : i32
    %c0_i32_1 = arith.constant 0 : i32
    return %c0_i32, %c0_i32_0 : i32, i32
  }
  func.func @transform_1(%arg0: i32, %arg1: i32) -> (i32, i32, i32) {
    %c0_i32 = arith.constant 0 : i32
    %c0_i32_0 = arith.constant 0 : i32
    return %arg0, %c0_i32, %arg1 : i32, i32, i32
  }
  func.func @transform_2(%arg0: i32, %arg1: i32) -> (i32, i32, i32) {
    %c0_i32 = arith.constant 0 : i32
    %c0_i32_0 = arith.constant 0 : i32
    return %arg0, %c0_i32, %arg1 : i32, i32, i32
  }
}

</mosaic_0001>

<bundles_post_ra>
// kernel: tpu_custom_call.1
= control target key start
LH: loop header
LB: loop body
LE: loop exit
PB: predicated region body
PF: predicated region fallthrough
CT: control target
= control target key end

     0   :  { %7 = vsyncpa [#allocation3], 0  ;;  %s1825_s0 = inlined_call_operand.hbm [shape: f32[4,4], index: 0, kind: input, shape index: {}]   ;;  %s1826_s1 = inlined_call_operand.hbm [shape: f32[2,4,4096], index: 1, kind: input, shape index: {}]   ;;  %s1827_s2 = inlined_call_operand.hbm [shape: f32[2,4,4096], index: 2, kind: output, shape index: {}]  }
   0x1   :  { %8 = vsyncpa [#allocation6], 0 }
   0x2   :  { %10 = vsyncpa [#allocation6 + $0x1], 0 }
   0x3   :  { %11 = vsyncpa [#allocation4], 0 }
   0x4   :  { %13 = vsyncpa [#allocation4 + $0x1], 0  ;;  %s1521_s9 = smov 0   ;;  %s1523_s10 = smov 0  }
   0x5   :  { %s1525_s11 = smov 0   ;;  %s1527_s12 = smov 0  }
   0x6   :  { %s1529_s13 = smov 0   ;;  %s1531_s14 = smov 0  }
   0x7 LB: > { %s1201_s15 = sadd.s32 4294967295, %s1503_s14   ;;  %s1202_s16 = sadd.s32 4294967294, %s1503_s14   ;;  %s1503_s14 = sphi %s1531_s14, %s19_s14   ;;  %s1499_s13 = sphi %s1529_s13, %s1839_s13   ;;  %s1495_s12 = sphi %s1527_s12, %s1838_s12   ;;  %s1491_s11 = sphi %s1525_s11, %s1837_s11   ;;  %s1487_s10 = sphi %s1523_s10, %s1836_s10   ;;  %s1483_s9 = sphi %s1521_s9, %s1835_s9  }
   0x8   : > { %p74_p0 = scmp.ne.s32.totalorder %s1487_s10, %s1483_s9  ;;  %p1555_p1 = scmp.eq.s32.totalorder %s1201_s15, 0 }
   0x9   : > { %p1559_p2 = scmp.eq.s32.totalorder %s1201_s15, 1  ;;  %p106_p3 = scmp.eq.s32.totalorder %s1202_s16, 1 }
   0xa   : > { %p1565_p4 = por %p1555_p1, %p74_p0  ;;  %p1203_p5 = scmp.ge.s32.totalorder %s1503_s14, 1 }
   0xb   : > { %p1570_p6 = por %p106_p3, %p74_p0  ;;  %p113_p7 = scmp.lt.s32.totalorder %s1503_s14, 3 }
   0xc   : > { %s125_s23 = sshll.u32 %s1825_s0, 4  ;;  %p1205_p9 = scmp.ge.s32.totalorder %s1503_s14, 2  ;;  %s126_s23 = int_to_ptr.hbm [resolvable:$true] %s125_s23 }
   0xd   : > { %p1578_p8 = pnand %p1203_p5, %p113_p7  ;;  %s1505_s25 = smov [#allocation2]  }
   0xe   : > { %s127_s26 = sshll.u32 %s1505_s25, 4  ;;  %s31_s27 = sadd.s32 1, %s1499_s13  ;;  %s128_s26 = int_to_ptr.vmem [resolvable:$true] %s127_s26 }
   0xf   : > { %p1292_p10 = pneg %p1578_p8  ;;  %p33_p12 = scmp.ge.s32.totalorder %s31_s27, 2 }
  0x10   : > { %s61_s28 = sadd.s32 1, %s1491_s11  ;;  %p68_p13 = scmp.ne.s32.totalorder %s1491_s11, %s1487_s10 }
  0x11   : > { %p1293_p11 = pnand %p1292_p10, %p1555_p1  ;;  %p69_p0 = scmp.eq.s32.totalorder %s1503_s14, 0 }
  0x12   : > { %s1841_s27 = smov (%p33_p12, %s31_s27), 0  ;;  %p1600_p5 = por %p1559_p2, %p68_p13 }
  0x13   : > { %1295 = dma.hbm_to_vmem [thread:$0]  (!%p1293_p11), %s126_s23, 64, %s128_s26, [#allocation3]  }
  0x14   : > { %p1594_p3 = por %p69_p0, %p68_p13  ;;  %s56_s3 = ssub.s32 %s1499_s13, %s1841_s27 }
  0x15   : > { %p1305_p7 = scmp.lt.s32.totalorder %s1503_s14, 2  ;;  %p59_p10 = scmp.eq.s32.totalorder %s56_s3, 0 }
  0x16   : > { %s138_s4 = sand.u32 1, %s1491_s11   ;;  %s1282_s7 = sshll.u32 %s1499_s13, 7 }
  0x17   : > { %s1206_s5 = sshll.u32 %s138_s4, 7  ;;  %s149_s16 = scalar_lea.hbm %s1826_s1, %s1282_s7 }
  0x18   : > { %s1609_s6 = scalar_select %p59_p10, %s1491_s11, %s61_s28  }
  0x19   : > { %s142_s21 = scalar_lea.vmem [#allocation5], %s1206_s5  ;;  %s151_s18 = sshll.u32 %s149_s16, 4  ;;  %s152_s18 = int_to_ptr.hbm [resolvable:$true] %s151_s18 }
  0x1a   : > { %s153_s22 = sshll.u32 %s142_s21, 4  ;;  %p1297_p2 = pnand %p1305_p7, %p1594_p3  ;;  %s154_s22 = int_to_ptr.vmem [resolvable:$true] %s153_s22 }
  0x1b   : > { %s139_s23 = scalar_lea.sflag [#allocation6], %s138_s4  ;;  %162 = sbr.rel (%p1578_p8) target bundleno = 241 (0xf1), region = 28 }
  0x1c   : > { %1299 = dma.hbm_to_vmem [thread:$0]  (!%p1297_p2), %s152_s18, 2048, %s154_s22, %s139_s23  }
  0x20   : > { %1470 = dma.done.wait (%p1555_p1), [#allocation3], 64  }
  0x21   : > { %1472 = vsyncadd (%p1555_p1), [#allocation3], 4294967232  ;;  %s1624_s25 = sand.u32 1, %s1487_s10  }
  0x22   : > { %s1211_s26 = sshll.u32 %s1624_s25, 7  ;;  %s170_s28 = scalar_lea.sflag [#allocation6], %s1624_s25 }
  0x23   : > { %s1630_s29 = scalar_lea.vmem [#allocation5], %s1211_s26 }
  0x24   : > { %1474 = dma.done.wait (%p1565_p4), %s170_s28, 2048  }
  0x25   : > { %1476 = vsyncadd (%p1565_p4), %s170_s28, 4294965248  ;;  %v199_v0 = vld [vmem:[%s1630_s29 + $0x8] sm:$0xff]  ;;  %v201_v1 = vld [vmem:[%s1630_s29 + $0x18] sm:$0xff]  ;;  %vm285_vm0 = vcmask 1043456   ;;  %vm281_vm1 = vcmask 31744   ;;  %s1753_s17 = scalar_lea.vmem [#allocation7], %s1211_s26 }
  0x26   : > { %232 = vst [vmem:[#allocation1 + $0x10] ss:$2 sm:$0xff] %v199_v0  ;;  %v198_v2 = vld [vmem:[%s1630_s29] sm:$0xff]  ;;  %v200_v3 = vld [vmem:[%s1630_s29 + $0x10] sm:$0xff]  ;;  %v203_v4 = vld [vmem:[%s1630_s29 + $0x28] sm:$0xff]  ;;  %s1283_s19 = sshll.u32 %s1495_s12, 7 }
  0x27   : > { %236 = vst [vmem:[#allocation1 + $0x30] ss:$2 sm:$0xff] %v201_v1  ;;  %v1641_v5 = vld [vmem:[#allocation2] sm:$0xf]  ;;  %v202_v10 = vld [vmem:[%s1630_s29 + $0x20] sm:$0xff]  ;;  %v204_v14 = vld [vmem:[%s1630_s29 + $0x30] sm:$0xff]  ;;  %s1100_s4 = scalar_lea.hbm %s1827_s2, %s1283_s19 }
  0x28   : > { %230 = vst [vmem:[#allocation1] ss:$2 sm:$0xff] %v198_v2  ;;  %v205_v6 = vld [vmem:[%s1630_s29 + $0x38] sm:$0xff]  ;;  %v207_v17 = vld [vmem:[%s1630_s29 + $0x48] sm:$0xff]  ;;  %v206_v21 = vld [vmem:[%s1630_s29 + $0x40] sm:$0xff]  ;;  %s1102_s5 = sshll.u32 %s1753_s17, 4  ;;  %s1103_s5 = int_to_ptr.vmem [resolvable:$true] %s1102_s5 }
  0x29   : > { %234 = vst [vmem:[#allocation1 + $0x20] ss:$2 sm:$0xff] %v200_v3  ;;  %v209_v18 = vld [vmem:[%s1630_s29 + $0x58] sm:$0xff]  ;;  %v208_v24 = vld [vmem:[%s1630_s29 + $0x50] sm:$0xff]  ;;  %v211_v29 = vld [vmem:[%s1630_s29 + $0x68] sm:$0xff]  ;;  %s1104_s7 = sshll.u32 %s1100_s4, 4  ;;  %s1105_s7 = int_to_ptr.hbm [resolvable:$true] %s1104_s7 }
  0x2a   : > { %v213_v30 = vld [vmem:[%s1630_s29 + $0x78] sm:$0xff]  ;;  %v210_v33 = vld [vmem:[%s1630_s29 + $0x60] sm:$0xff]  ;;  %v212_v36 = vld [vmem:[%s1630_s29 + $0x70] sm:$0xff]  ;;  %s1087_s12 = scalar_lea.sflag [#allocation4], %s1624_s25  ;;  %s1431_s8 = sshra.s32 %s1105_s7, 4  ;;  %s1432_s8 = int_to_ptr.hbm [resolvable:$true] %s1431_s8 }
  0x2b   : > { %s1433_s15 = scalar_lea.hbm %s1432_s8, 128  ;;  %s1437_s22 = scalar_lea.hbm %s1827_s2, 256 }
  0x2c   : > { %p1434_p1 = scmp.ne.s32.totalorder %s1432_s8, %s1433_s15  ;;  %p1438_p11 = scmp.lt.s32.totalorder %s1432_s8, %s1827_s2 }
  0x2d   : > { %v240_v7 = vld.sshfl [vmem:[#allocation1 + $0x18] sm:$0xff pattern:$0x75316420]  ;;  %v239_v8 = vld.sshfl [vmem:[#allocation1 + $0x10] sm:$0xff pattern:$0x75316420]  ;;  %p1439_p12 = scmp.lt.s32.totalorder %s1437_s22, %s1433_s15 }
  0x2e   : > { %1219 = vmatpush.msk.msra.mxu3 %vm285_vm0, %v240_v7  ;;  %v244_v9 = vld.sshfl [vmem:[#allocation1 + $0x38] sm:$0xff pattern:$0x75316420]  ;;  %246 = vst [vmem:[#allocation1 + $0x10] ss:$2 sm:$0xff] %v203_v4  ;;  %1217 = vmatpush.msk.msra.mxu2 %vm285_vm0, %v239_v8  ;;  %p1435_p4 = pnand %p1434_p1, %p1600_p5 }
  0x2f   : > { %1220 = vmatmul.msk.f32.vlgmr.msra.gmra.mxu3 %vm281_vm1, %v1641_v5  ;;  %1218 = vmatmul.msk.f32.vlgmr.msra.gmra.mxu2 %vm281_vm1, %v1641_v5  ;;  %v243_v11 = vld.sshfl [vmem:[#allocation1 + $0x30] sm:$0xff pattern:$0x75316420]  ;;  %v238_v12 = vld.sshfl [vmem:[#allocation1 + $0x8] sm:$0xff pattern:$0x75316420]  ;;  %p1440_p13 = por %p1439_p12, %p1438_p11 }
  0x30   : > { %1227 = vmatpush.msk.msrb.mxu3 %vm285_vm0, %v244_v9  ;;  %248 = vst [vmem:[#allocation1 + $0x30] ss:$2 sm:$0xff] %v205_v6  ;;  %1225 = vmatpush.msk.msrb.mxu2 %vm285_vm0, %v243_v11  ;;  %v242_v13 = vld.sshfl [vmem:[#allocation1 + $0x28] sm:$0xff pattern:$0x75316420]  ;;  %p1436_p8 = pneg %p1435_p4 }
  0x31   : > { %1215 = vmatpush.msk.msra.mxu1 %vm285_vm0, %v238_v12  ;;  %v237_v15 = vld.sshfl [vmem:[#allocation1] sm:$0xff pattern:$0x75316420] }
  0x32   : > { %v241_v16 = vld.sshfl [vmem:[#allocation1 + $0x20] sm:$0xff pattern:$0x75316420]  ;;  %1216 = vmatmul.msk.f32.vlgmr.msra.gmra.mxu1 %vm281_vm1, %v1641_v5  ;;  %245 = vst [vmem:[#allocation1] ss:$2 sm:$0xff] %v202_v10  ;;  %1213 = vmatpush.msk.msra.mxu0 %vm285_vm0, %v237_v15  ;;  %p1441_p0 = pnand %p1440_p13, %p1436_p8 }
  0x33   : > { %1223 = vmatpush.msk.msrb.mxu1 %vm285_vm0, %v242_v13  ;;  %1214 = vmatmul.msk.f32.vlgmr.msra.gmra.mxu0 %vm281_vm1, %v1641_v5  ;;  %247 = vst [vmem:[#allocation1 + $0x20] ss:$2 sm:$0xff] %v204_v14 }
  0x34   : > { %1221 = vmatpush.msk.msrb.mxu0 %vm285_vm0, %v241_v16 }
  0x35   : > { %v252_v19 = vld.sshfl [vmem:[#allocation1 + $0x18] sm:$0xff pattern:$0x75316420]  ;;  %v251_v20 = vld.sshfl [vmem:[#allocation1 + $0x10] sm:$0xff pattern:$0x75316420] }
  0x36   : > { %1235 = vmatpush.msk.msra.mxu3 %vm285_vm0, %v252_v19  ;;  %258 = vst [vmem:[#allocation1 + $0x10] ss:$2 sm:$0xff] %v207_v17  ;;  %1233 = vmatpush.msk.msra.mxu2 %vm285_vm0, %v251_v20 }
  0x37   : > { %1228 = vmatmul.msk.f32.vlgmr.msrb.gmra.mxu3 %vm281_vm1, %v1641_v5  ;;  %1226 = vmatmul.msk.f32.vlgmr.msrb.gmra.mxu2 %vm281_vm1, %v1641_v5  ;;  %v256_v22 = vld.sshfl [vmem:[#allocation1 + $0x38] sm:$0xff pattern:$0x75316420]  ;;  %v255_v23 = vld.sshfl [vmem:[#allocation1 + $0x30] sm:$0xff pattern:$0x75316420] }
  0x38   : > { %1243 = vmatpush.msk.msrb.mxu3 %vm285_vm0, %v256_v22  ;;  %260 = vst [vmem:[#allocation1 + $0x30] ss:$2 sm:$0xff] %v209_v18  ;;  %1241 = vmatpush.msk.msrb.mxu2 %vm285_vm0, %v255_v23 }
  0x39   : > { %v250_v25 = vld.sshfl [vmem:[#allocation1 + $0x8] sm:$0xff pattern:$0x75316420]  ;;  %v249_v26 = vld.sshfl [vmem:[#allocation1] sm:$0xff pattern:$0x75316420] }
  0x3a   : > { %1224 = vmatmul.msk.f32.vlgmr.msrb.gmra.mxu1 %vm281_vm1, %v1641_v5  ;;  %257 = vst [vmem:[#allocation1] ss:$2 sm:$0xff] %v206_v21  ;;  %1229 = vmatpush.msk.msra.mxu0 %vm285_vm0, %v249_v26  ;;  %v254_v27 = vld.sshfl [vmem:[#allocation1 + $0x28] sm:$0xff pattern:$0x75316420] }
  0x3b   : > { %1231 = vmatpush.msk.msra.mxu1 %vm285_vm0, %v250_v25  ;;  %1222 = vmatmul.msk.f32.vlgmr.msrb.gmra.mxu0 %vm281_vm1, %v1641_v5  ;;  %v253_v28 = vld.sshfl [vmem:[#allocation1 + $0x20] sm:$0xff pattern:$0x75316420] }
  0x3c   : > { %259 = vst [vmem:[#allocation1 + $0x20] ss:$2 sm:$0xff] %v208_v24  ;;  %1237 = vmatpush.msk.msrb.mxu0 %vm285_vm0, %v253_v28 }
  0x3d   : > { %1239 = vmatpush.msk.msrb.mxu1 %vm285_vm0, %v254_v27  ;;  %v264_v31 = vld.sshfl [vmem:[#allocation1 + $0x18] sm:$0xff pattern:$0x75316420]  ;;  %v263_v32 = vld.sshfl [vmem:[#allocation1 + $0x10] sm:$0xff pattern:$0x75316420] }
  0x3e   : > { %270 = vst [vmem:[#allocation1 + $0x10] ss:$2 sm:$0xff] %v211_v29 }
  0x3f   : > { %1236 = vmatmul.msk.f32.vlgmr.msra.gmra.mxu3 %vm281_vm1, %v1641_v5  ;;  %1234 = vmatmul.msk.f32.vlgmr.msra.gmra.mxu2 %vm281_vm1, %v1641_v5  ;;  %v268_v34 = vld.sshfl [vmem:[#allocation1 + $0x38] sm:$0xff pattern:$0x75316420]  ;;  %v267_v35 = vld.sshfl [vmem:[#allocation1 + $0x30] sm:$0xff pattern:$0x75316420] }
  0x40   : > { %1251 = vmatpush.msk.msra.mxu3 %vm285_vm0, %v264_v31  ;;  %1249 = vmatpush.msk.msra.mxu2 %vm285_vm0, %v263_v32  ;;  %272 = vst [vmem:[#allocation1 + $0x30] ss:$2 sm:$0xff] %v213_v30 }
  0x41   : > { %v262_v37 = vld.sshfl [vmem:[#allocation1 + $0x8] sm:$0xff pattern:$0x75316420]  ;;  %v261_v38 = vld.sshfl [vmem:[#allocation1] sm:$0xff pattern:$0x75316420] }
  0x42   : > { %1232 = vmatmul.msk.f32.vlgmr.msra.gmra.mxu1 %vm281_vm1, %v1641_v5  ;;  %269 = vst [vmem:[#allocation1] ss:$2 sm:$0xff] %v210_v33 }
  0x43   : > { %1230 = vmatmul.msk.f32.vlgmr.msra.gmra.mxu0 %vm281_vm1, %v1641_v5  ;;  %1247 = vmatpush.msk.msra.mxu1 %vm285_vm0, %v262_v37  ;;  %v266_v39 = vld.sshfl [vmem:[#allocation1 + $0x28] sm:$0xff pattern:$0x75316420]  ;;  %v265_v40 = vld.sshfl [vmem:[#allocation1 + $0x20] sm:$0xff pattern:$0x75316420] }
  0x44   : > { %1245 = vmatpush.msk.msra.mxu0 %vm285_vm0, %v261_v38  ;;  %271 = vst [vmem:[#allocation1 + $0x20] ss:$2 sm:$0xff] %v212_v36 }
  0x45   : > { %v276_v41 = vld.sshfl [vmem:[#allocation1 + $0x18] sm:$0xff pattern:$0x75316420]  ;;  %v275_v42 = vld.sshfl [vmem:[#allocation1 + $0x10] sm:$0xff pattern:$0x75316420] }
  0x47   : > { %1244 = vmatmul.msk.f32.vlgmr.msrb.gmra.mxu3 %vm281_vm1, %v1641_v5  ;;  %1242 = vmatmul.msk.f32.vlgmr.msrb.gmra.mxu2 %vm281_vm1, %v1641_v5  ;;  %v280_v45 = vld.sshfl [vmem:[#allocation1 + $0x38] sm:$0xff pattern:$0x75316420]  ;;  %v279_v46 = vld.sshfl [vmem:[#allocation1 + $0x30] sm:$0xff pattern:$0x75316420] }
  0x48   : > { %1259 = vmatpush.msk.msrb.mxu3 %vm285_vm0, %v268_v34  ;;  %1257 = vmatpush.msk.msrb.mxu2 %vm285_vm0, %v267_v35 }
  0x49   : > { %v274_v43 = vld.sshfl [vmem:[#allocation1 + $0x8] sm:$0xff pattern:$0x75316420]  ;;  %v273_v44 = vld.sshfl [vmem:[#allocation1] sm:$0xff pattern:$0x75316420] }
  0x4a   : > { %1240 = vmatmul.msk.f32.vlgmr.msrb.gmra.mxu1 %vm281_vm1, %v1641_v5 }
  0x4b   : > { %1238 = vmatmul.msk.f32.vlgmr.msrb.gmra.mxu0 %vm281_vm1, %v1641_v5  ;;  %1255 = vmatpush.msk.msrb.mxu1 %vm285_vm0, %v266_v39  ;;  %v278_v47 = vld.sshfl [vmem:[#allocation1 + $0x28] sm:$0xff pattern:$0x75316420]  ;;  %v277_v48 = vld.sshfl [vmem:[#allocation1 + $0x20] sm:$0xff pattern:$0x75316420] }
  0x4c   : > { %1253 = vmatpush.msk.msrb.mxu0 %vm285_vm0, %v265_v40 }
  0x4f   : > { %1252 = vmatmul.msk.f32.vlgmr.msra.gmra.mxu3 %vm281_vm1, %v1641_v5  ;;  %1250 = vmatmul.msk.f32.vlgmr.msra.gmra.mxu2 %vm281_vm1, %v1641_v5 }
  0x50   : > { %1267 = vmatpush.msk.msra.mxu3 %vm285_vm0, %v276_v41  ;;  %1265 = vmatpush.msk.msra.mxu2 %vm285_vm0, %v275_v42 }
  0x52   : > { %1248 = vmatmul.msk.f32.vlgmr.msra.gmra.mxu1 %vm281_vm1, %v1641_v5 }
  0x53   : > { %1246 = vmatmul.msk.f32.vlgmr.msra.gmra.mxu0 %vm281_vm1, %v1641_v5  ;;  %1263 = vmatpush.msk.msra.mxu1 %vm285_vm0, %v274_v43 }
  0x54   : > { %1261 = vmatpush.msk.msra.mxu0 %vm285_vm0, %v273_v44 }
  0x57   : > { %1260 = vmatmul.msk.f32.vlgmr.msrb.gmra.mxu3 %vm281_vm1, %v1641_v5  ;;  %1258 = vmatmul.msk.f32.vlgmr.msrb.gmra.mxu2 %vm281_vm1, %v1641_v5 }
  0x58   : > { %1275 = vmatpush.msk.msrb.mxu3 %vm285_vm0, %v280_v45  ;;  %1273 = vmatpush.msk.msrb.mxu2 %vm285_vm0, %v279_v46 }
  0x5a   : > { %1256 = vmatmul.msk.f32.vlgmr.msrb.gmra.mxu1 %vm281_vm1, %v1641_v5 }
  0x5b   : > { %1254 = vmatmul.msk.f32.vlgmr.msrb.gmra.mxu0 %vm281_vm1, %v1641_v5  ;;  %1271 = vmatpush.msk.msrb.mxu1 %vm285_vm0, %v278_v47 }
  0x5c   : > { %1269 = vmatpush.msk.msrb.mxu0 %vm285_vm0, %v277_v48 }
  0x5f   : > { %1268 = vmatmul.msk.f32.vlgmr.msra.gmra.mxu3 %vm281_vm1, %v1641_v5  ;;  %1266 = vmatmul.msk.f32.vlgmr.msra.gmra.mxu2 %vm281_vm1, %v1641_v5 }
  0x62   : > { %1264 = vmatmul.msk.f32.vlgmr.msra.gmra.mxu1 %vm281_vm1, %v1641_v5 }
  0x63   : > { %1262 = vmatmul.msk.f32.vlgmr.msra.gmra.mxu0 %vm281_vm1, %v1641_v5 }
  0x67   : > { %1276 = vmatmul.msk.f32.vlgmr.msrb.gmra.mxu3 %vm281_vm1, %v1641_v5  ;;  %1274 = vmatmul.msk.f32.vlgmr.msrb.gmra.mxu2 %vm281_vm1, %v1641_v5 }
  0x6a   : > { %1272 = vmatmul.msk.f32.vlgmr.msrb.gmra.mxu1 %vm281_vm1, %v1641_v5 }
  0x6b   : > { %1270 = vmatmul.msk.f32.vlgmr.msrb.gmra.mxu0 %vm281_vm1, %v1641_v5 }
  0xaf   : > { %v387_v49 = vpop.f32.mrf.mxu1 }
  0xb0   : > { %v1022_v50 = vrot.slane %v387_v49, 4  ;;  %v367_v51 = vpop.f32.mrf.mxu0 }
  0xb2   : > { %v427_v52 = vpop.f32.mrf.mxu3  ;;  %v1038_v53 = vsel %vm285_vm0, %v367_v51, %v1022_v50  ;;  %v407_v54 = vpop.f32.mrf.mxu2 }
  0xb3   : > { %v1023_v55 = vrot.slane %v427_v52, 4  ;;  %1070 = vst [vmem:[%s1753_s17] sm:$0xff] %v1038_v53 }
  0xb5   : > { %v1039_v56 = vsel %vm285_vm0, %v407_v54, %v1023_v55 }
  0xb6   : > { %1071 = vst [vmem:[%s1753_s17 + $0x8] sm:$0xff] %v1039_v56 }
  0xb7   : > { %v467_v57 = vpop.f32.mrf.mxu1 }
  0xb8   : > { %v1024_v58 = vrot.slane %v467_v57, 4  ;;  %v447_v59 = vpop.f32.mrf.mxu0 }
  0xba   : > { %v507_v60 = vpop.f32.mrf.mxu3  ;;  %v1040_v61 = vsel %vm285_vm0, %v447_v59, %v1024_v58  ;;  %v487_v62 = vpop.f32.mrf.mxu2 }
  0xbb   : > { %v1025_v63 = vrot.slane %v507_v60, 4  ;;  %1072 = vst [vmem:[%s1753_s17 + $0x10] sm:$0xff] %v1040_v61 }
  0xbd   : > { %v1041_v0 = vsel %vm285_vm0, %v487_v62, %v1025_v63 }
  0xbe   : > { %1073 = vst [vmem:[%s1753_s17 + $0x18] sm:$0xff] %v1041_v0 }
  0xbf   : > { %v547_v1 = vpop.f32.mrf.mxu1 }
  0xc0   : > { %v1026_v2 = vrot.slane %v547_v1, 4  ;;  %v527_v3 = vpop.f32.mrf.mxu0 }
  0xc2   : > { %v587_v4 = vpop.f32.mrf.mxu3  ;;  %v1042_v5 = vsel %vm285_vm0, %v527_v3, %v1026_v2  ;;  %v567_v6 = vpop.f32.mrf.mxu2 }
  0xc3   : > { %v1027_v7 = vrot.slane %v587_v4, 4  ;;  %1074 = vst [vmem:[%s1753_s17 + $0x20] sm:$0xff] %v1042_v5 }
  0xc5   : > { %v1043_v8 = vsel %vm285_vm0, %v567_v6, %v1027_v7 }
  0xc6   : > { %1075 = vst [vmem:[%s1753_s17 + $0x28] sm:$0xff] %v1043_v8 }
  0xc7   : > { %v627_v9 = vpop.f32.mrf.mxu1 }
  0xc8   : > { %v1028_v10 = vrot.slane %v627_v9, 4  ;;  %v607_v11 = vpop.f32.mrf.mxu0 }
  0xca   : > { %v667_v12 = vpop.f32.mrf.mxu3  ;;  %v1044_v13 = vsel %vm285_vm0, %v607_v11, %v1028_v10  ;;  %v647_v14 = vpop.f32.mrf.mxu2 }
  0xcb   : > { %v1029_v15 = vrot.slane %v667_v12, 4  ;;  %1076 = vst [vmem:[%s1753_s17 + $0x30] sm:$0xff] %v1044_v13 }
  0xcd   : > { %v1045_v16 = vsel %vm285_vm0, %v647_v14, %v1029_v15 }
  0xce   : > { %1077 = vst [vmem:[%s1753_s17 + $0x38] sm:$0xff] %v1045_v16 }
  0xcf   : > { %v707_v17 = vpop.f32.mrf.mxu1 }
  0xd0   : > { %v1030_v18 = vrot.slane %v707_v17, 4  ;;  %v687_v19 = vpop.f32.mrf.mxu0 }
  0xd2   : > { %v747_v20 = vpop.f32.mrf.mxu3  ;;  %v1046_v21 = vsel %vm285_vm0, %v687_v19, %v1030_v18  ;;  %v727_v22 = vpop.f32.mrf.mxu2 }
  0xd3   : > { %v1031_v23 = vrot.slane %v747_v20, 4  ;;  %1078 = vst [vmem:[%s1753_s17 + $0x40] sm:$0xff] %v1046_v21 }
  0xd5   : > { %v1047_v24 = vsel %vm285_vm0, %v727_v22, %v1031_v23 }
  0xd6   : > { %1079 = vst [vmem:[%s1753_s17 + $0x48] sm:$0xff] %v1047_v24 }
  0xd7   : > { %v787_v25 = vpop.f32.mrf.mxu1 }
  0xd8   : > { %v1032_v26 = vrot.slane %v787_v25, 4  ;;  %v767_v27 = vpop.f32.mrf.mxu0 }
  0xda   : > { %v827_v28 = vpop.f32.mrf.mxu3  ;;  %v1048_v29 = vsel %vm285_vm0, %v767_v27, %v1032_v26  ;;  %v807_v30 = vpop.f32.mrf.mxu2 }
  0xdb   : > { %v1033_v31 = vrot.slane %v827_v28, 4  ;;  %1080 = vst [vmem:[%s1753_s17 + $0x50] sm:$0xff] %v1048_v29 }
  0xdd   : > { %v1049_v32 = vsel %vm285_vm0, %v807_v30, %v1033_v31 }
  0xde   : > { %1081 = vst [vmem:[%s1753_s17 + $0x58] sm:$0xff] %v1049_v32 }
  0xdf   : > { %v867_v33 = vpop.f32.mrf.mxu1 }
  0xe0   : > { %v1034_v34 = vrot.slane %v867_v33, 4  ;;  %v847_v35 = vpop.f32.mrf.mxu0 }
  0xe2   : > { %v907_v36 = vpop.f32.mrf.mxu3  ;;  %v1050_v37 = vsel %vm285_vm0, %v847_v35, %v1034_v34  ;;  %v887_v38 = vpop.f32.mrf.mxu2 }
  0xe3   : > { %v1035_v39 = vrot.slane %v907_v36, 4  ;;  %1082 = vst [vmem:[%s1753_s17 + $0x60] sm:$0xff] %v1050_v37 }
  0xe5   : > { %v1051_v40 = vsel %vm285_vm0, %v887_v38, %v1035_v39 }
  0xe6   : > { %1083 = vst [vmem:[%s1753_s17 + $0x68] sm:$0xff] %v1051_v40 }
  0xe7   : > { %v947_v41 = vpop.f32.mrf.mxu1 }
  0xe8   : > { %v1036_v42 = vrot.slane %v947_v41, 4  ;;  %v927_v43 = vpop.f32.mrf.mxu0 }
  0xea   : > { %v987_v44 = vpop.f32.mrf.mxu3  ;;  %v1052_v45 = vsel %vm285_vm0, %v927_v43, %v1036_v42  ;;  %v967_v46 = vpop.f32.mrf.mxu2 }
  0xeb   : > { %v1037_v47 = vrot.slane %v987_v44, 4  ;;  %1084 = vst [vmem:[%s1753_s17 + $0x70] sm:$0xff] %v1052_v45 }
  0xed   : > { %v1053_v48 = vsel %vm285_vm0, %v967_v46, %v1037_v47 }
  0xee   : > { %1085 = vst [vmem:[%s1753_s17 + $0x78] sm:$0xff] %v1053_v48 }
  0xef   : > { %1444 = shalt.err (!%p1441_p0)
}
  0xf0   : > { %1290 = dma.vmem_to_hbm [thread:$0]  (%p1600_p5), %s1103_s5, 2048, %s1105_s7, %s1087_s12  }
  0xf1 PF: > { %s1116_s25 = sand.u32 1, %s1483_s9   ;;  %p1301_p3 = pnand %p1205_p9, %p1570_p6 }
  0xf2   : > { %s1117_s26 = scalar_lea.sflag [#allocation4], %s1116_s25 }
  0xf3   : > { %p1302_p7 = pneg %p1301_p3 }
  0xf5   : > { %1478 = dma.done.wait (%p1302_p7), %s1117_s26, 2048  }
  0xf6   : > { %1480 = vsyncadd (%p1302_p7), %s1117_s26, 4294965248  ;;  %s19_s14 = sadd.s32 1, %s1503_s14   ;;  %s1835_s9 = smov %s1487_s10 }
  0xf7   : > { %p16_p10 = scmp.ge.s32.totalorder %s19_s14, 4   ;;  %s1836_s10 = smov %s1491_s11 }
  0xf8   : > { %s1837_s11 = smov %s1609_s6  ;;  %s1838_s12 = smov %s1499_s13 }
  0xf9   : > { %s1839_s13 = smov %s1841_s27  ;;  %18 = sbr.rel (!%p16_p10) target bundleno = 7 (0x7), region = 81 }
  0xfe   :  { %1123 = vsyncpa [#allocation3], 1 }
  0xff   :  { %1125 = vsyncpa [#allocation3 + $0x1], 1 }
 0x100   :  { %1126 = vsyncpa [#allocation6], 1 }
 0x101   :  { %1128 = vsyncpa [#allocation6 + $0x1], 1 }
 0x102   :  { %1129 = vsyncpa [#allocation4], 1 }
 0x103   :  { %1131 = vsyncpa [#allocation4 + $0x1], 1 }

</bundles_post_ra>
